<compile_context>
chip_gen: v7x
topology: tpu7x:2x2x1
jax: 0.10.0
libtpu: 0.0.40
codegen_flags: <defaults>
</compile_context>

<pallas_src>
import functools

import jax
import jax.numpy as jnp
from jax.experimental import pallas as pl
from jax.experimental.pallas import tpu as pltpu


def _round_up(x, m):
    return (x + m - 1) // m * m


def decoder_kernel(z_ref, w1_ref, b1_ref, w2_ref, b2_ref, o_ref):
    # Layer 1: bf16 operands into the MXU, f32 accumulation.
    h = jnp.dot(z_ref[...], w1_ref[...], preferred_element_type=jnp.float32)
    # Bias + ReLU in f32 on the VPU (v5e has no bf16 VPU path).
    h = jnp.maximum(h + b1_ref[...], 0.0)
    # Layer 2: cast the activation to bf16 only at the MXU boundary.
    y = jnp.dot(h.astype(jnp.bfloat16), w2_ref[...],
                preferred_element_type=jnp.float32)
    y = y + b2_ref[...]
    # Sigmoid on the EUP, f32 output.
    o_ref[...] = jax.nn.sigmoid(y).astype(o_ref.dtype)


@functools.partial(jax.jit, static_argnames=("block_b",))
def pallas_decode(z, w1, b1, w2, b2, *, block_b=512):
    B, L = z.shape
    H = w1.shape[1]
    O = w2.shape[1]

    # Lane-dense padding: HIDDEN / OUT to multiples of 128, batch to tiles of 8.
    Hp = _round_up(H, 128)
    Op = _round_up(O, 128)
    TB = min(block_b, _round_up(B, 8))   # batch tile (rows per grid step)
    Bp = _round_up(B, TB)

    # Zero padding is numerically exact on the unpadded region:
    #   padded hidden units: ReLU(z @ 0 + 0) = 0; their W2 rows are zero.
    #   padded output columns are sliced away below.
    zp = jnp.zeros((Bp, L), jnp.bfloat16).at[:B].set(z.astype(jnp.bfloat16))
    w1p = jnp.zeros((L, Hp), jnp.bfloat16).at[:, :H].set(w1.astype(jnp.bfloat16))
    b1p = jnp.zeros((1, Hp), jnp.float32).at[:, :H].set(b1.astype(jnp.float32))
    w2p = jnp.zeros((Hp, Op), jnp.bfloat16).at[:H, :O].set(w2.astype(jnp.bfloat16))
    b2p = jnp.zeros((1, Op), jnp.float32).at[:, :O].set(b2.astype(jnp.float32))

    grid = (Bp // TB,)

    flops = 2 * Bp * (L * Hp + Hp * Op)
    bytes_accessed = (zp.size * 2 + w1p.size * 2 + w2p.size * 2
                      + b1p.size * 4 + b2p.size * 4 + Bp * Op * 4)

    # VMEM budget (per step, double-buffered z/out + resident weights):
    #   2*TB*L*2 + 2*TB*Op*4 + L*Hp*2 + Hp*Op*2 + biases  — well under the
    #   32 MiB default scoped limit (and v7x's 64 MiB physical) at TB<=512
    #   for these MLP shapes, so no vmem_limit_bytes override is needed.
    out = pl.pallas_call(
        decoder_kernel,
        out_shape=jax.ShapeDtypeStruct((Bp, Op), jnp.float32),
        grid=grid,
        in_specs=[
            pl.BlockSpec((TB, L), lambda i: (i, 0)),    # z: tiled over batch
            pl.BlockSpec((L, Hp), lambda i: (0, 0)),    # w1: resident in VMEM
            pl.BlockSpec((1, Hp), lambda i: (0, 0)),    # b1: resident
            pl.BlockSpec((Hp, Op), lambda i: (0, 0)),   # w2: resident
            pl.BlockSpec((1, Op), lambda i: (0, 0)),    # b2: resident
        ],
        out_specs=pl.BlockSpec((TB, Op), lambda i: (i, 0)),
        compiler_params=pltpu.CompilerParams(
            dimension_semantics=("parallel",)),         # megacore batch split on v7x
        cost_estimate=pl.CostEstimate(
            flops=flops,
            transcendentals=Bp * Op,                    # sigmoid exp
            bytes_accessed=bytes_accessed),
    )(zp, w1p, b1p, w2p, b2p)

    return out[:B, :O]


def reference_decode(z, w1, b1, w2, b2):
    h = jnp.maximum(z @ w1 + b1, 0.0)
    return jax.nn.sigmoid(h @ w2 + b2)


if __name__ == "__main__":
    # Small, forward-consistent shapes.
    B, LATENT, HIDDEN, OUT = 8, 32, 64, 128

    key = jax.random.PRNGKey(0)
    kz, kw1, kb1, kw2, kb2 = jax.random.split(key, 5)

    z = jax.random.normal(kz, (B, LATENT), dtype=jnp.float32)
    # Deterministic parameter init (fan-in scaled, like nn.Linear defaults).
    w1 = jax.random.uniform(kw1, (LATENT, HIDDEN), jnp.float32,
                            -1.0 / LATENT ** 0.5, 1.0 / LATENT ** 0.5)
    b1 = jax.random.uniform(kb1, (1, HIDDEN), jnp.float32,
                            -1.0 / LATENT ** 0.5, 1.0 / LATENT ** 0.5)
    w2 = jax.random.uniform(kw2, (HIDDEN, OUT), jnp.float32,
                            -1.0 / HIDDEN ** 0.5, 1.0 / HIDDEN ** 0.5)
    b2 = jax.random.uniform(kb2, (1, OUT), jnp.float32,
                            -1.0 / HIDDEN ** 0.5, 1.0 / HIDDEN ** 0.5)

    out = pallas_decode(z, w1, b1, w2, b2)
    jax.block_until_ready(out)

    ref = reference_decode(z, w1, b1, w2, b2)
    assert out.shape == (B, OUT)
    # bf16 matmul operands (f32 accumulate) -> looser tolerance than pure f32.
    assert jnp.allclose(out, ref, atol=2e-2, rtol=2e-2), float(
        jnp.max(jnp.abs(out - ref)))

    print("KERNEL_OK")
</pallas_src>

<mosaic_0001>
module attributes {stable_mosaic.version = 11 : i64} {
  func.func @decoder_kernel(%arg0: i32, %arg1: memref<8x32xbf16, #tpu.memory_space<vmem>>, %arg2: memref<32x128xbf16, #tpu.memory_space<vmem>>, %arg3: memref<1x128xf32, #tpu.memory_space<vmem>>, %arg4: memref<128x128xbf16, #tpu.memory_space<vmem>>, %arg5: memref<1x128xf32, #tpu.memory_space<vmem>>, %arg6: memref<8x128xf32, #tpu.memory_space<vmem>>) attributes {dimension_semantics = [#tpu.dimension_semantics<parallel>], iteration_bounds = array<i64: 1>, scalar_prefetch = 0 : i64, scratch_operands = 0 : i64, tpu.core_type = #tpu.core_type<tc>, window_params = [{transform_indices = @transform_0, window_bounds = array<i64: 8, 32>}, {pipeline_mode = #tpu.pipeline_mode<synchronous>, transform_indices = @transform_1, window_bounds = array<i64: 32, 128>}, {pipeline_mode = #tpu.pipeline_mode<synchronous>, transform_indices = @transform_2, window_bounds = array<i64: 1, 128>}, {pipeline_mode = #tpu.pipeline_mode<synchronous>, transform_indices = @transform_3, window_bounds = array<i64: 128, 128>}, {pipeline_mode = #tpu.pipeline_mode<synchronous>, transform_indices = @transform_4, window_bounds = array<i64: 1, 128>}, {transform_indices = @transform_5, window_bounds = array<i64: 8, 128>}]} {
    %c0 = arith.constant 0 : index
    %c0_0 = arith.constant 0 : index
    %0 = vector.load %arg1[%c0, %c0_0] : memref<8x32xbf16, #tpu.memory_space<vmem>>, vector<8x32xbf16>
    %c0_1 = arith.constant 0 : index
    %c0_2 = arith.constant 0 : index
    %1 = vector.load %arg2[%c0_1, %c0_2] : memref<32x128xbf16, #tpu.memory_space<vmem>>, vector<32x128xbf16>
    %cst = arith.constant dense<0.000000e+00> : vector<8x128xf32>
    %2 = tpu.matmul %0, %1, %cst {dimension_numbers = #tpu.dot_dimension_numbers<[1], [0], [0], [1], [0, 0, 1, 1], [], []>} : vector<8x32xbf16>, vector<32x128xbf16>, vector<8x128xf32> -> vector<8x128xf32>
    %c0_3 = arith.constant 0 : index
    %c0_4 = arith.constant 0 : index
    %3 = vector.load %arg3[%c0_3, %c0_4] : memref<1x128xf32, #tpu.memory_space<vmem>>, vector<1x128xf32>
    %4 = vector.broadcast %3 : vector<1x128xf32> to vector<8x128xf32>
    %5 = arith.addf %2, %4 : vector<8x128xf32>
    %cst_5 = arith.constant 0.000000e+00 : f32
    %6 = vector.broadcast %cst_5 : f32 to vector<8x128xf32>
    %7 = arith.maximumf %5, %6 : vector<8x128xf32>
    %8 = arith.truncf %7 : vector<8x128xf32> to vector<8x128xbf16>
    %c0_6 = arith.constant 0 : index
    %c0_7 = arith.constant 0 : index
    %9 = vector.load %arg4[%c0_6, %c0_7] : memref<128x128xbf16, #tpu.memory_space<vmem>>, vector<128x128xbf16>
    %cst_8 = arith.constant dense<0.000000e+00> : vector<8x128xf32>
    %10 = tpu.matmul %8, %9, %cst_8 {dimension_numbers = #tpu.dot_dimension_numbers<[1], [0], [0], [1], [0, 0, 1, 1], [], []>} : vector<8x128xbf16>, vector<128x128xbf16>, vector<8x128xf32> -> vector<8x128xf32>
    %c0_9 = arith.constant 0 : index
    %c0_10 = arith.constant 0 : index
    %11 = vector.load %arg5[%c0_9, %c0_10] : memref<1x128xf32, #tpu.memory_space<vmem>>, vector<1x128xf32>
    %12 = vector.broadcast %11 : vector<1x128xf32> to vector<8x128xf32>
    %13 = arith.addf %10, %12 : vector<8x128xf32>
    %14 = arith.negf %13 : vector<8x128xf32>
    %15 = math.exp %14 : vector<8x128xf32>
    %cst_11 = arith.constant 1.000000e+00 : f32
    %16 = vector.broadcast %cst_11 : f32 to vector<8x128xf32>
    %17 = arith.addf %16, %15 : vector<8x128xf32>
    %18 = arith.divf %16, %17 : vector<8x128xf32>
    %c0_12 = arith.constant 0 : index
    %c0_13 = arith.constant 0 : index
    %19 = vector.load %arg6[%c0_12, %c0_13] : memref<8x128xf32, #tpu.memory_space<vmem>>, vector<8x128xf32>
    tpu.vector_store %arg6[%c0_12, %c0_13], %18 {strides = array<i32>} : memref<8x128xf32, #tpu.memory_space<vmem>>, vector<8x128xf32>,
    return
  }
  func.func @transform_0(%arg0: i32) -> (i32, i32) {
    %c0_i32 = arith.constant 0 : i32
    %c0_i32_0 = arith.constant 0 : i32
    return %arg0, %c0_i32 : i32, i32
  }
  func.func @transform_1(%arg0: i32) -> (i32, i32) {
    %c0_i32 = arith.constant 0 : i32
    %c0_i32_0 = arith.constant 0 : i32
    %c0_i32_1 = arith.constant 0 : i32
    return %c0_i32, %c0_i32_0 : i32, i32
  }
  func.func @transform_2(%arg0: i32) -> (i32, i32) {
    %c0_i32 = arith.constant 0 : i32
    %c0_i32_0 = arith.constant 0 : i32
    %c0_i32_1 = arith.constant 0 : i32
    return %c0_i32, %c0_i32_0 : i32, i32
  }
  func.func @transform_3(%arg0: i32) -> (i32, i32) {
    %c0_i32 = arith.constant 0 : i32
    %c0_i32_0 = arith.constant 0 : i32
    %c0_i32_1 = arith.constant 0 : i32
    return %c0_i32, %c0_i32_0 : i32, i32
  }
  func.func @transform_4(%arg0: i32) -> (i32, i32) {
    %c0_i32 = arith.constant 0 : i32
    %c0_i32_0 = arith.constant 0 : i32
    %c0_i32_1 = arith.constant 0 : i32
    return %c0_i32, %c0_i32_0 : i32, i32
  }
  func.func @transform_5(%arg0: i32) -> (i32, i32) {
    %c0_i32 = arith.constant 0 : i32
    %c0_i32_0 = arith.constant 0 : i32
    return %arg0, %c0_i32 : i32, i32
  }
}

</mosaic_0001>

<bundles_post_ra>
// kernel: pallas_decode.1
= control target key start
LH: loop header
LB: loop body
LE: loop exit
PB: predicated region body
PF: predicated region fallthrough
CT: control target
= control target key end

     0   :  { %v319_v1 = vmov 0.0   ;;  %vm320_vm0 = vmmov 0   ;;  %vm46_vm1 = vcmask 261120   ;;  %s403_s0 = inlined_call_operand.vmem [shape: bf16[8,32], index: 0, kind: input, shape index: {}]   ;;  %s404_s1 = inlined_call_operand.vmem [shape: bf16[32,128], index: 1, kind: input, shape index: {}]   ;;  %s405_s2 = inlined_call_operand.vmem [shape: f32[1,128], index: 2, kind: input, shape index: {}]   ;;  %s406_s3 = inlined_call_operand.vmem [shape: bf16[128,128], index: 3, kind: input, shape index: {}]   ;;  %s407_s4 = inlined_call_operand.vmem [shape: f32[1,128], index: 4, kind: input, shape index: {}]   ;;  %s408_s5 = inlined_call_operand.hbm [shape: f32[8,128], index: 5, kind: output, shape index: {}]  }
   0x1   :  { %v281_v0 = vld [vmem:[%s404_s1] sm:$0xff]   ;;  %250 = vmatprep.subr.bf16.mxu0 %v319_v1  ;;  %258 = vmatprep.subr.bf16.mxu1 %v319_v1  ;;  %v282_v2 = vld [vmem:[%s404_s1 + $0x8] sm:$0xff]   ;;  %v285_v6 = vld [vmem:[%s406_s3 + $0x10] sm:$0xff]  }
   0x2   :  { %251 = vmatpush3.bf16.msra.mxu0 %v281_v0  ;;  %254 = vmatprep.mubr.msk.bf16.mxu0 %vm320_vm0, %v319_v1  ;;  %v283_v3 = vld [vmem:[%s406_s3] sm:$0xff]   ;;  %v284_v4 = vld [vmem:[%s406_s3 + $0x8] sm:$0xff]  }
   0x3   :  { %252 = vmatprep.subr.bf16.mxu0 %v319_v1  ;;  %274 = vmatprep.mubr.msk.bf16.mxu1 %vm320_vm0, %v319_v1  ;;  %v22_v5 = vld [vmem:[%s403_s0] sm:$0xf] }
   0x4   :  { %259 = vmatpush3.bf16.msra.mxu1 %v283_v3 }
   0x5   :  { %260 = vmatprep.subr.bf16.mxu1 %v319_v1 }
   0x6   :  { %253 = vmatpush3.bf16.msra.mxu0 %v282_v2 }
   0x8   :  { %261 = vmatpush3.bf16.msra.mxu1 %v284_v4 }
   0x9   :  { %255 = vmatmul.mubr.msk.bf16.vlgmr.msra.gmra.mrb[0].mxu0 %vm46_vm1, %v22_v5  ;;  %262 = vmatprep.subr.bf16.mxu1 %v319_v1 }
   0xa   :  { %10 = vsyncpa [#allocation3], 0  ;;  %v286_v7 = vld [vmem:[%s406_s3 + $0x18] sm:$0xff]   ;;  %v287_v8 = vld [vmem:[%s406_s3 + $0x20] sm:$0xff]  }
   0xb   :  { %v288_v9 = vld [vmem:[%s406_s3 + $0x28] sm:$0xff]   ;;  %v289_v10 = vld [vmem:[%s406_s3 + $0x30] sm:$0xff]   ;;  %v290_v11 = vld [vmem:[%s406_s3 + $0x38] sm:$0xff]  }
   0xc   :  { %263 = vmatpush3.bf16.msra.mxu1 %v285_v6  ;;  %v224_v12 = vld [vmem:[%s405_s2] ss:$0 sm:$0xff]  ;;  %s321_s2 = smov [#allocation2]  }
   0xd   :  { %264 = vmatprep.subr.bf16.mxu1 %v319_v1  ;;  %v228_v20 = vld [vmem:[%s407_s4] ss:$0 sm:$0xff]  ;;  %s216_s3 = sshll.u32 %s321_s2, 4  ;;  %s217_s3 = int_to_ptr.vmem [resolvable:$true] %s216_s3 }
   0xe   :  { %s295_s17 = scalar_lea.vmem %s217_s3, 128  ;;  %p300_p1 = scmp.lt.s32.totalorder %s217_s3, %s217_s3 }
   0xf   :  { %p296_p0 = scmp.ne.s32.totalorder %s217_s3, %s295_s17  ;;  %p301_p2 = scmp.lt.s32.totalorder %s295_s17, %s295_s17 }
  0x10   :  { %265 = vmatpush3.bf16.msra.mxu1 %v286_v7 }
  0x11   :  { %266 = vmatprep.subr.bf16.mxu1 %v319_v1  ;;  %p302_p3 = por %p301_p2, %p300_p1 }
  0x13   :  { %p303_p4 = pnand %p302_p3, %p296_p0 }
  0x14   :  { %267 = vmatpush3.bf16.msra.mxu1 %v287_v8 }
  0x15   :  { %268 = vmatprep.subr.bf16.mxu1 %v319_v1 }
  0x18   :  { %269 = vmatpush3.bf16.msra.mxu1 %v288_v9 }
  0x19   :  { %270 = vmatprep.subr.bf16.mxu1 %v319_v1 }
  0x1c   :  { %271 = vmatpush3.bf16.msra.mxu1 %v289_v10 }
  0x1d   :  { %272 = vmatprep.subr.bf16.mxu1 %v319_v1 }
  0x20   :  { %273 = vmatpush3.bf16.msra.mxu1 %v290_v11 }
  0xdc   :  { %v84_v13 = vpop.f32.mrb[0].mxu0 }
  0xdd   :  { %v85_v14 = vadd.f32 %v224_v12, %v84_v13  ;;  %v256_v15 = vpop.f32.mrb[1].mxu0 }
  0xde   :  { %v87_v16 = vpop.f32.mrb[2].mxu0 }
  0xdf   :  { %v90_v17 = vmax.f32 %v85_v14, 0.0  ;;  %v257_v18 = vpop.f32.mrb[3].mxu0 }
  0xe1   :  { %v91_v19 = vpack.c.bf16 %v90_v17, %v90_v17 }
  0xe3   :  { %275 = vmatmul.mubr.bf16.vlgmr.msra.gmra.mrb[0].mxu1 %v91_v19 }
 0x1b6   :  { %v197_v21 = vpop.f32.mrb[0].mxu1 }
 0x1b7   :  { %v198_v22 = vadd.f32 %v228_v20, %v197_v21  ;;  %v276_v23 = vpop.f32.mrb[1].mxu1 }
 0x1b8   :  { %v200_v24 = vpop.f32.mrb[2].mxu1 }
 0x1b9   :  { %v237_v25 = vmul.f32 -1.442695, %v198_v22  ;;  %v277_v26 = vpop.f32.mrb[3].mxu1 }
 0x1bb   :  { %291 = vpow2.f32 %v237_v25 }
 0x1c5   :  { %v292_v27 = vpop.eup %291 }
 0x1c6   :  { %v206_v28 = vadd.f32 1.0, %v292_v27 }
 0x1c8   :  { %293 = vrcp.f32 %v206_v28 }
 0x1d2   :  { %v294_v29 = vpop.eup %293 }
 0x1d3   :  { %209 = vst [vmem:[#allocation2] sm:$0xff] %v294_v29 }
 0x1d4   :  { %306 = shalt.err (!%p303_p4)
}
 0x1d5   :  { %s307_s19 = scalar_lea.hbm %s408_s5, 128 }
 0x1d6   :  { %p308_p5 = scmp.ne.s32.totalorder %s408_s5, %s307_s19  ;;  %p311_p6 = scmp.lt.u32.totalorder %s307_s19, %s408_s5 }
 0x1d8   :  { %p313_p7 = pnand %p311_p6, %p308_p5 }
 0x1da   :  { %316 = shalt.err (!%p313_p7)
}
 0x1db   :  { %219 = dma.vmem_to_hbm [thread:$0]  %s217_s3, 128, %s408_s5, [#allocation3]  }
 0x1dc   :  { %317 = dma.done.wait [#allocation3], 128  }
 0x1dd   :  { %318 = vsyncadd [#allocation3], 4294967168 }
 0x1de   :  { %223 = vsyncpa [#allocation3], 1 }

</bundles_post_ra>
